<compile_context>
chip_gen: v6e
topology: v6e:2x2x1
jax: 0.10.0
libtpu: 0.0.40
codegen_flags: <defaults>
</compile_context>

<pallas_src>
import functools

import jax
import jax.numpy as jnp
from jax.experimental import pallas as pl
from jax.experimental.pallas import tpu as pltpu


def _round_up(x, m):
    return ((x + m - 1) // m) * m


def _vmem_capacity_bytes():
    try:
        return int(pltpu.get_tpu_info().vmem_capacity_bytes)
    except Exception:
        return 64 << 20  # conservative (v7x physical VMEM per TensorCore)


def _pick_tile_a(c_in, itemsize, hw, vmem_cap):
    """HW tile (lanes) for the pooling kernel: ~4 MiB of input per grid step,
    multiple of 256 (chunk pairs), bounded unroll (<=32 chunks), and the
    double-buffered input stream kept within ~1/3 of VMEM."""
    per_lane = max(1, c_in * itemsize)
    tile = (4 << 20) // per_lane
    tile = (tile // 256) * 256
    tile = max(256, min(tile, 32 * 128))
    tile = min(tile, _round_up(hw, 256))
    max_by_vmem = (vmem_cap // 3) // (2 * per_lane)
    max_by_vmem = max(256, (max_by_vmem // 256) * 256)
    return max(256, min(tile, max_by_vmem))


def _pick_tile_b(c_out, itemsize, hw, vmem_cap):
    """HW tile (lanes) for the broadcast writer, decoupled from kernel A and
    sized from C_out: ~8 MiB of output per block to amortize per-step overhead
    on the dominant (write-only) HBM stream."""
    per_lane = max(1, c_out * itemsize)
    tile = (8 << 20) // per_lane
    tile = (tile // 128) * 128
    tile = max(512, min(tile, 32768))
    tile = min(tile, _round_up(hw, 128))
    max_by_vmem = (vmem_cap // 3) // (2 * per_lane)
    max_by_vmem = max(128, (max_by_vmem // 128) * 128)
    return max(128, min(tile, max_by_vmem))


def _pool_conv_bn_relu_kernel(x_ref, w_ref, b_ref, y_ref, acc_ref, *,
                              inv_hw, hw, tile_hw, ragged):
    # x_ref:   (1, C_in, TILE_HW)   one HW tile of one batch element
    # w_ref:   (C_out, C_in)        1x1 conv weight with BN scale folded in
    # b_ref:   (C_out, 1)           folded BN bias
    # y_ref:   (1, C_out, 1)        per-batch result (resident over the HW axis)
    # acc_ref: (C_in, 128) f32      partial-sum accumulator (VMEM scratch)
    j = pl.program_id(1)

    @pl.when(j == 0)
    def _init():
        acc_ref[...] = jnp.zeros_like(acc_ref)

    if ragged:
        # No host-side padding: out-of-bounds lanes of the final partial block
        # are undefined and must be masked before accumulating.
        rem = hw - j * tile_hw          # >= tile_hw on all but the last tile
        lane = jax.lax.broadcasted_iota(jnp.int32, (1, 128), 1)

    # Accumulate THROUGH the ref, two 128-lane chunks per accumulator store.
    # No (C_in, 128) value is carried live across the loop, so there is no
    # vreg spill pressure at large C_in, and the kernel stays HBM-bound.
    n_chunks = tile_hw // 128
    for p in range(n_chunks // 2):
        c0 = (2 * p) * 128
        c1 = c0 + 128
        a = x_ref[0, :, c0:c0 + 128].astype(jnp.float32)
        b = x_ref[0, :, c1:c1 + 128].astype(jnp.float32)
        if ragged:
            a = jnp.where(lane + c0 < rem, a, 0.0)
            b = jnp.where(lane + c1 < rem, b, 0.0)
        acc_ref[...] += a + b

    @pl.when(j == pl.num_programs(1) - 1)
    def _finish():
        # (C_out, C_in) x (C_in, 128) on the MXU (full-width columns instead of
        # a degenerate matvec), then one cross-lane reduce, folded BN bias, ReLU.
        prod = jnp.dot(w_ref[...].astype(jnp.float32), acc_ref[...],
                       preferred_element_type=jnp.float32)        # (C_out, 128)
        yv = jnp.sum(prod, axis=-1, keepdims=True) * inv_hw        # conv(avg pool)
        yv = jnp.maximum(yv + b_ref[...], 0.0)                     # + BN bias, ReLU
        y_ref[0] = yv.astype(y_ref.dtype)


def _broadcast_kernel(y_ref, o_ref):
    # "Upsample" of a 1x1 map to (H, W) == broadcast (same for any interpolate
    # mode).  Lane-dense (C_out, TILE_HW) store: the dominant HBM stream.
    c_out, tile_b = o_ref.shape[1], o_ref.shape[2]
    o_ref[0] = jnp.broadcast_to(y_ref[0], (c_out, tile_b)).astype(o_ref.dtype)


def global_pooling(x, conv_w, bn_gamma, bn_beta, bn_mean, bn_var, eps=1e-5):
    """x: (N, C_in, H, W).  Returns (N, C_out, H, W), dtype of x."""
    n, c_in, h, w = x.shape
    c_out = conv_w.shape[0]
    hw = h * w

    # Fold inference-mode BN into the conv weight (scale) and a bias vector.
    conv_w = conv_w.reshape(c_out, c_in).astype(jnp.float32)
    scale = bn_gamma.astype(jnp.float32) / jnp.sqrt(bn_var.astype(jnp.float32) + eps)
    # Keep the folded weight in the activation precision: bf16 weights halve the
    # resident VMEM / HBM cost on bf16 activations (MXU consumes bf16 natively).
    w_dtype = jnp.bfloat16 if x.dtype == jnp.bfloat16 else jnp.float32
    w_folded = (conv_w * scale[:, None]).astype(w_dtype)                  # (C_out, C_in)
    bias = (bn_beta.astype(jnp.float32)
            - bn_mean.astype(jnp.float32) * scale).reshape(c_out, 1)      # (C_out, 1)

    vmem_cap = _vmem_capacity_bytes()
    in_itemsize = x.dtype.itemsize
    out_itemsize = x.dtype.itemsize

    x_flat = x.reshape(n, c_in, hw)          # free (contiguous NCHW)

    # ---- Kernel A: pooled sum -> folded 1x1 conv + BN + ReLU -> (N, C_out, 1)
    tile_a = _pick_tile_a(c_in, in_itemsize, hw, vmem_cap)
    num_tiles_a = pl.cdiv(hw, tile_a)
    ragged_a = (hw % tile_a) != 0

    vmem_a = (2 * c_in * tile_a * in_itemsize                 # double-buffered input
              + 2 * (c_out * c_in * jnp.dtype(w_dtype).itemsize + c_out * 4)
              + c_in * 128 * 4                                # accumulator scratch
              + 2 * c_out * 4                                 # tiny output
              + (6 << 20))                                    # headroom
    vmem_a = int(max(16 << 20, min(vmem_a, vmem_cap - (6 << 20))))

    y = pl.pallas_call(
        functools.partial(_pool_conv_bn_relu_kernel,
                          inv_hw=1.0 / float(hw), hw=hw, tile_hw=tile_a,
                          ragged=ragged_a),
        out_shape=jax.ShapeDtypeStruct((n, c_out, 1), jnp.float32),
        grid_spec=pltpu.PrefetchScalarGridSpec(
            num_scalar_prefetch=0,
            grid=(n, num_tiles_a),
            in_specs=[
                pl.BlockSpec((1, c_in, tile_a), lambda i, j: (i, 0, j)),
                pl.BlockSpec((c_out, c_in), lambda i, j: (0, 0)),
                pl.BlockSpec((c_out, 1), lambda i, j: (0, 0)),
            ],
            out_specs=pl.BlockSpec((1, c_out, 1), lambda i, j: (i, 0, 0)),
            scratch_shapes=[pltpu.VMEM((c_in, 128), jnp.float32)],
        ),
        compiler_params=pltpu.CompilerParams(
            dimension_semantics=("parallel", "arbitrary"),
            vmem_limit_bytes=vmem_a),
    )(x_flat, w_folded, bias)

    # ---- Kernel B: broadcast to (N, C_out, HW), lane-dense write stream ------
    tile_b = _pick_tile_b(c_out, out_itemsize, hw, vmem_cap)
    num_tiles_b = pl.cdiv(hw, tile_b)

    vmem_b = (2 * c_out * tile_b * out_itemsize + 2 * c_out * 4 + (4 << 20))
    vmem_b = int(max(16 << 20, min(vmem_b, vmem_cap - (6 << 20))))

    out_flat = pl.pallas_call(
        _broadcast_kernel,
        out_shape=jax.ShapeDtypeStruct((n, c_out, hw), x.dtype),
        grid_spec=pltpu.PrefetchScalarGridSpec(
            num_scalar_prefetch=0,
            grid=(n, num_tiles_b),
            in_specs=[pl.BlockSpec((1, c_out, 1), lambda i, j: (i, 0, 0))],
            out_specs=pl.BlockSpec((1, c_out, tile_b), lambda i, j: (i, 0, j)),
        ),
        compiler_params=pltpu.CompilerParams(
            dimension_semantics=("parallel", "parallel"),
            vmem_limit_bytes=vmem_b),
    )(y)

    return out_flat.reshape(n, c_out, h, w)


def _reference(x, conv_w, bn_gamma, bn_beta, bn_mean, bn_var, eps=1e-5):
    xf = x.astype(jnp.float32)
    n, c_in, h, w = xf.shape
    c_out = conv_w.shape[0]
    pool = jnp.mean(xf, axis=(2, 3))                     # (N, C_in)
    yv = pool @ conv_w.reshape(c_out, c_in).T            # (N, C_out)
    yv = (yv - bn_mean) / jnp.sqrt(bn_var + eps) * bn_gamma + bn_beta
    yv = jnp.maximum(yv, 0.0)
    return jnp.broadcast_to(yv[:, :, None, None], (n, c_out, h, w))


if __name__ == "__main__":
    key = jax.random.PRNGKey(0)
    k_x, k_w, k_g, k_b, k_m, k_v = jax.random.split(key, 6)

    N, C_IN, C_OUT, H, W = 2, 4, 8, 16, 16

    x = jax.random.normal(k_x, (N, C_IN, H, W), dtype=jnp.float32)
    conv_w = jax.random.normal(k_w, (C_OUT, C_IN), dtype=jnp.float32) * 0.1
    bn_gamma = 1.0 + 0.1 * jax.random.normal(k_g, (C_OUT,), dtype=jnp.float32)
    bn_beta = 0.1 * jax.random.normal(k_b, (C_OUT,), dtype=jnp.float32)
    bn_mean = 0.05 * jax.random.normal(k_m, (C_OUT,), dtype=jnp.float32)
    bn_var = jnp.abs(jax.random.normal(k_v, (C_OUT,), dtype=jnp.float32)) + 0.5

    # --- f32 path ---
    out = jax.block_until_ready(
        global_pooling(x, conv_w, bn_gamma, bn_beta, bn_mean, bn_var))
    ref = _reference(x, conv_w, bn_gamma, bn_beta, bn_mean, bn_var)
    assert out.shape == (N, C_OUT, H, W)
    assert jnp.allclose(out, ref, atol=1e-4, rtol=1e-4)

    # --- bf16-in-HBM path (f32 accumulation, bf16 folded weight) ---
    x_bf16 = x.astype(jnp.bfloat16)
    out_bf16 = jax.block_until_ready(
        global_pooling(x_bf16, conv_w, bn_gamma, bn_beta, bn_mean, bn_var))
    ref_bf16 = _reference(x_bf16, conv_w, bn_gamma, bn_beta, bn_mean, bn_var)
    assert out_bf16.dtype == jnp.bfloat16
    assert jnp.allclose(out_bf16.astype(jnp.float32), ref_bf16,
                        atol=5e-2, rtol=5e-2)

    # --- ragged-HW path (HW not a multiple of the tile -> in-kernel masking) ---
    H2, W2 = 15, 15
    x2 = jax.random.normal(jax.random.PRNGKey(1), (N, C_IN, H2, W2),
                           dtype=jnp.float32)
    out2 = jax.block_until_ready(
        global_pooling(x2, conv_w, bn_gamma, bn_beta, bn_mean, bn_var))
    ref2 = _reference(x2, conv_w, bn_gamma, bn_beta, bn_mean, bn_var)
    assert out2.shape == (N, C_OUT, H2, W2)
    assert jnp.allclose(out2, ref2, atol=1e-4, rtol=1e-4)

    print("KERNEL_OK")
</pallas_src>

<mosaic_0001>
module attributes {stable_mosaic.version = 11 : i64} {
  func.func @_pool_conv_bn_relu_kernel(%arg0: i32, %arg1: i32, %arg2: memref<1x4x256xf32, #tpu.memory_space<vmem>>, %arg3: memref<8x4xf32, #tpu.memory_space<vmem>>, %arg4: memref<8x1xf32, #tpu.memory_space<vmem>>, %arg5: memref<1x8x1xf32, #tpu.memory_space<vmem>>, %arg6: memref<4x128xf32, #tpu.memory_space<vmem>>) attributes {dimension_semantics = [#tpu.dimension_semantics<parallel>, #tpu.dimension_semantics<arbitrary>], iteration_bounds = array<i64: 2, 1>, scalar_prefetch = 0 : i64, scratch_operands = 1 : i64, tpu.core_type = #tpu.core_type<tc>, window_params = [{transform_indices = @transform_0, window_bounds = array<i64: 1, 4, 256>}, {pipeline_mode = #tpu.pipeline_mode<synchronous>, transform_indices = @transform_1, window_bounds = array<i64: 8, 4>}, {pipeline_mode = #tpu.pipeline_mode<synchronous>, transform_indices = @transform_2, window_bounds = array<i64: 8, 1>}, {transform_indices = @transform_3, window_bounds = array<i64: 1, 8, 1>}]} {
    %c0_i32 = arith.constant 0 : i32
    %0 = arith.cmpi eq, %arg1, %c0_i32 : i32
    %1 = arith.extui %0 : i1 to i32
    %c0_i32_0 = arith.constant 0 : i32
    %2 = arith.cmpi ne, %1, %c0_i32_0 : i32
    scf.if %2 {
      %cst = arith.constant 0.000000e+00 : f32
      %14 = vector.broadcast %cst : f32 to vector<4x128xf32>
      %c0_11 = arith.constant 0 : index
      %c0_12 = arith.constant 0 : index
      %15 = vector.load %arg6[%c0_11, %c0_12] : memref<4x128xf32, #tpu.memory_space<vmem>>, vector<4x128xf32>
      tpu.vector_store %arg6[%c0_11, %c0_12], %14 {strides = array<i32>} : memref<4x128xf32, #tpu.memory_space<vmem>>, vector<4x128xf32>,
    } else {
    }
    %c0 = arith.constant 0 : index
    %c0_1 = arith.constant 0 : index
    %c0_2 = arith.constant 0 : index
    %3 = vector.load %arg2[%c0, %c0_1, %c0_2] : memref<1x4x256xf32, #tpu.memory_space<vmem>>, vector<1x4x128xf32>
    %4 = vector.shape_cast %3 : vector<1x4x128xf32> to vector<4x128xf32>
    %c0_3 = arith.constant 0 : index
    %c0_4 = arith.constant 0 : index
    %c128 = arith.constant 128 : index
    %5 = vector.load %arg2[%c0_3, %c0_4, %c128] : memref<1x4x256xf32, #tpu.memory_space<vmem>>, vector<1x4x128xf32>
    %6 = vector.shape_cast %5 : vector<1x4x128xf32> to vector<4x128xf32>
    %c0_5 = arith.constant 0 : index
    %c0_6 = arith.constant 0 : index
    %7 = vector.load %arg6[%c0_5, %c0_6] : memref<4x128xf32, #tpu.memory_space<vmem>>, vector<4x128xf32>
    %8 = arith.addf %4, %6 : vector<4x128xf32>
    %9 = arith.addf %7, %8 : vector<4x128xf32>
    %c0_7 = arith.constant 0 : index
    %c0_8 = arith.constant 0 : index
    %10 = vector.load %arg6[%c0_7, %c0_8] : memref<4x128xf32, #tpu.memory_space<vmem>>, vector<4x128xf32>
    tpu.vector_store %arg6[%c0_7, %c0_8], %9 {strides = array<i32>} : memref<4x128xf32, #tpu.memory_space<vmem>>, vector<4x128xf32>,
    %c0_i32_9 = arith.constant 0 : i32
    %11 = arith.cmpi eq, %arg1, %c0_i32_9 : i32
    %12 = arith.extui %11 : i1 to i32
    %c0_i32_10 = arith.constant 0 : i32
    %13 = arith.cmpi ne, %12, %c0_i32_10 : i32
    scf.if %13 {
      %c0_11 = arith.constant 0 : index
      %c0_12 = arith.constant 0 : index
      %14 = vector.load %arg3[%c0_11, %c0_12] : memref<8x4xf32, #tpu.memory_space<vmem>>, vector<8x4xf32>
      %c0_13 = arith.constant 0 : index
      %c0_14 = arith.constant 0 : index
      %15 = vector.load %arg6[%c0_13, %c0_14] : memref<4x128xf32, #tpu.memory_space<vmem>>, vector<4x128xf32>
      %cst = arith.constant dense<0.000000e+00> : vector<8x128xf32>
      %16 = tpu.matmul %14, %15, %cst {dimension_numbers = #tpu.dot_dimension_numbers<[1], [0], [0], [1], [0, 0, 1, 1], [], []>} : vector<8x4xf32>, vector<4x128xf32>, vector<8x128xf32> -> vector<8x128xf32>
      %cst_15 = arith.constant dense<0.000000e+00> : vector<8xf32>
      %17 = vector.multi_reduction <add>, %16, %cst_15 [1] : vector<8x128xf32> to vector<8xf32>
      %18 = vector.shape_cast %17 : vector<8xf32> to vector<8x1xf32>
      %cst_16 = arith.constant 3.906250e-03 : f32
      %19 = vector.broadcast %cst_16 : f32 to vector<8x1xf32>
      %20 = arith.mulf %18, %19 : vector<8x1xf32>
      %c0_17 = arith.constant 0 : index
      %c0_18 = arith.constant 0 : index
      %21 = vector.load %arg4[%c0_17, %c0_18] : memref<8x1xf32, #tpu.memory_space<vmem>>, vector<8x1xf32>
      %22 = arith.addf %20, %21 : vector<8x1xf32>
      %cst_19 = arith.constant 0.000000e+00 : f32
      %23 = vector.broadcast %cst_19 : f32 to vector<8x1xf32>
      %24 = arith.maximumf %22, %23 : vector<8x1xf32>
      %c0_20 = arith.constant 0 : index
      %c0_21 = arith.constant 0 : index
      %c0_22 = arith.constant 0 : index
      %25 = vector.load %arg5[%c0_20, %c0_21, %c0_22] : memref<1x8x1xf32, #tpu.memory_space<vmem>>, vector<1x8x1xf32>
      %26 = vector.shape_cast %25 : vector<1x8x1xf32> to vector<8x1xf32>
      %27 = vector.shape_cast %24 : vector<8x1xf32> to vector<1x8x1xf32>
      tpu.vector_store %arg5[%c0_20, %c0_21, %c0_22], %27 {strides = array<i32>} : memref<1x8x1xf32, #tpu.memory_space<vmem>>, vector<1x8x1xf32>,
    } else {
    }
    return
  }
  func.func @transform_0(%arg0: i32, %arg1: i32) -> (i32, i32, i32) {
    %c0_i32 = arith.constant 0 : i32
    %c0_i32_0 = arith.constant 0 : i32
    return %arg0, %c0_i32, %arg1 : i32, i32, i32
  }
  func.func @transform_1(%arg0: i32, %arg1: i32) -> (i32, i32) {
    %c0_i32 = arith.constant 0 : i32
    %c0_i32_0 = arith.constant 0 : i32
    %c0_i32_1 = arith.constant 0 : i32
    return %c0_i32, %c0_i32_0 : i32, i32
  }
  func.func @transform_2(%arg0: i32, %arg1: i32) -> (i32, i32) {
    %c0_i32 = arith.constant 0 : i32
    %c0_i32_0 = arith.constant 0 : i32
    %c0_i32_1 = arith.constant 0 : i32
    return %c0_i32, %c0_i32_0 : i32, i32
  }
  func.func @transform_3(%arg0: i32, %arg1: i32) -> (i32, i32, i32) {
    %c0_i32 = arith.constant 0 : i32
    %c0_i32_0 = arith.constant 0 : i32
    %c0_i32_1 = arith.constant 0 : i32
    return %arg0, %c0_i32, %c0_i32_0 : i32, i32, i32
  }
}

</mosaic_0001>

<bundles_post_ra>
// kernel: tpu_custom_call.1
= control target key start
LH: loop header
LB: loop body
LE: loop exit
PB: predicated region body
PF: predicated region fallthrough
CT: control target
= control target key end

     0   :  { %s458_s12 = smov 0   ;;  %s460_s13 = smov 0   ;;  %s497_s0 = inlined_call_operand.vmem [shape: f32[2,4,256], index: 0, kind: input, shape index: {}]   ;;  %s498_s1 = inlined_call_operand.vmem [shape: f32[8,4], index: 1, kind: input, shape index: {}]   ;;  %s499_s2 = inlined_call_operand.vmem [shape: f32[8,1], index: 2, kind: input, shape index: {}]   ;;  %s500_s3 = inlined_call_operand.vmem [shape: f32[2,8,1], index: 3, kind: output, shape index: {}]  }
   0x1   :  { %s462_s14 = smov 0  }
   0x2 LB: > { %s25_s15 = sadd.s32 1, %s430_s13  ;;  %p370_p0 = scmp.ge.s32.totalorder %s434_s14, 1  ;;  %s434_s14 = sphi %s462_s14, %s13_s14   ;;  %s430_s13 = sphi %s460_s13, %s502_s13   ;;  %s426_s12 = sphi %s458_s12, %s501_s12  }
   0x3   : > { %p27_p1 = scmp.ge.s32.totalorder %s25_s15, 2  ;;  %p156_p2 = scmp.lt.s32.totalorder %s434_s14, 3 }
   0x5   : > { %s504_s15 = smov (%p27_p1, %s25_s15), 0  ;;  %p157_p3 = pnand %p370_p0, %p156_p2 }
   0x6   : > { %p184_p4 = scmp.lt.s32.totalorder (!%p157_p3), %s426_s12, 1 }
   0x7   : > { %160 = sbr.rel (%p157_p3) target bundleno = 370 (0x172), region = 32 }
   0xc   : > { %v436_v0 = vmov 0.0   ;;  %vm437_vm0 = vmmov 0   ;;  %s506_s12 = smov (!%p184_p4, %s426_s12), 1  ;;  %vm217_vm1 = vcmask 1043456   ;;  %v211_v6 = vld [vmem:[%s498_s1] sm:$0xff]  ;;  %vm213_vm2 = vcmask 31744  }
   0xd   : > { %201 = vst [vmem:[#allocation2] sm:$0xf] %v436_v0  ;;  %381 = vmatprep.subr.mxu0 %v436_v0  ;;  %383 = vmatprep.mubr.msk.f32.mxu0 %vm437_vm0, %v436_v0  ;;  %s378_s16 = sshll.u32 %s506_s12, 3  ;;  %v294_v11 = vld [vmem:[%s499_s2] sm:$0xff]  ;;  %vm297_vm3 = vcmask 7168  }
   0xe   : > { %s191_s19 = scalar_lea.vmem %s497_s0, %s378_s16  ;;  %s196_s26 = scalar_lea.vmem %s500_s3, %s378_s16 }
   0xf   : > { %v202_v1 = vld [vmem:[%s191_s19] sm:$0xf]  ;;  %v203_v2 = vld [vmem:[%s191_s19 + $0x4] sm:$0xf] }
  0x10   : > { %v205_v3 = vadd.f32 %v203_v2, %v202_v1 }
  0x14   : > { %v204_v4 = vld [vmem:[#allocation2] sm:$0xf] }
  0x15   : > { %v206_v5 = vadd.f32 %v205_v3, %v204_v4 }
  0x17   : > { %207 = vst [vmem:[#allocation2] sm:$0xf] %v206_v5 }
  0x1e   : > { %v212_v7 = vld [vmem:[#allocation2] sm:$0xf] }
  0x1f   : > { %382 = vmatpush3.msk.msra.mxu0 %vm217_vm1, %v212_v7 }
  0x20   : > { %384 = vmatmul.mubr.msk.f32.vlgmr.msra.gmra.mxu0 %vm213_vm2, %v211_v6 }
  0xe0   : > { %v287_v8 = vpop.f32.mrf.mxu0 }
  0xe1   : > { %291 = vadd.xlane.f32.xlu0 %v287_v8 }
  0xe2   : > { %v385_v9 = vpop.f32.mrf.mxu0 }
 0x16a   : > { %v292_v10 = vpop.xlane.xlu0 %291 }
 0x16b   : > { %v293_v12 = vmul.f32 0.00390625, %v292_v10 }
 0x16d   : > { %v295_v13 = vadd.f32 %v294_v11, %v293_v12 }
 0x16f   : > { %v296_v14 = vmax.f32 %v295_v13, 0.0 }
 0x171   : > { %298 = vst.msk [vmem:[%s196_s26] sm:$0xff] %vm297_vm3, %v296_v14 }
 0x172 PF: > { %s13_s14 = sadd.s32 1, %s434_s14   ;;  %s501_s12 = smov %s430_s13 }
 0x173   : > { %p10_p5 = scmp.ge.s32.totalorder %s13_s14, 4   ;;  %s502_s13 = smov %s504_s15 }
 0x175   :  { %12 = sbr.rel (!%p10_p5) target bundleno = 2 (0x2), region = 70 }

</bundles_post_ra>
